<compile_context>
chip_gen: v5e
topology: v5e:2x2
jax: 0.10.0
libtpu: 0.0.40
codegen_flags: <defaults>
</compile_context>

<pallas_src>
import functools

import jax
import jax.numpy as jnp
from jax.experimental import pallas as pl
from jax.experimental.pallas import tpu as pltpu


# ----------------------------- Pallas kernel ------------------------------ #
def _invconv_kernel(x_ref, w_ref, m_ref, z_ref, *, mxu_bf16=False):
    # x_ref: (C, tT)  input time-tile for one batch element
    # w_ref: (C, C)   folded dense 1x1-conv weight (VMEM resident, constant index_map)
    # m_ref: (1, tT)  f32 sequence-mask tile
    # z_ref: (C, tT)  output tile (lane-dense last dim -> unmasked vst)
    x = x_ref[...]
    w = w_ref[...]
    if mxu_bf16:
        # v5e large-C: halve MXU passes with bf16 operands, keep f32 accumulation.
        x = x.astype(jnp.bfloat16)
        w = w.astype(jnp.bfloat16)
    z = jnp.dot(w, x, preferred_element_type=jnp.float32)     # MXU, f32 acc
    z_ref[...] = (z * m_ref[...]).astype(z_ref.dtype)          # mask in f32, downcast at store


# ------------------------------- Tiling ------------------------------------ #
def _vmem_capacity_bytes():
    try:
        return int(pltpu.get_tpu_info().vmem_capacity_bytes)
    except Exception:
        return 64 * 1024 * 1024  # conservative default: v7x per-TensorCore VMEM


def _pick_time_tile(t, bytes_per_time_col, batch, tile_budget):
    """Largest lane-dense (128-multiple) time tile whose double-buffered in+out blocks
    fit `tile_budget`; for B==1 prefer an even grid extent (v7x 2-TC balance)."""
    t_ceil = max(128, -(-t // 128) * 128)
    cands = [tt for tt in (8192, 4096, 2048, 1024, 512, 256, 128)
             if tt <= t_ceil and 2 * tt * bytes_per_time_col <= tile_budget]
    if not cands:
        cands = [128]
    if batch == 1:
        for tt in cands:  # candidates are largest-first
            n = -(-t // tt)
            if n >= 2 and n % 2 == 0:
                return tt
    return cands[0]


def _invconv_pallas(x, w_full, mask_f32, out_dtype=None, mxu_bf16=False):
    """x: (B, C, T); w_full: (C, C) float32; mask_f32: (B, 1, T) float32."""
    b, c, t = x.shape
    out_dtype = x.dtype if out_dtype is None else out_dtype
    x_it = jnp.dtype(x.dtype).itemsize
    o_it = jnp.dtype(out_dtype).itemsize
    w_it = jnp.dtype(w_full.dtype).itemsize

    vmem_cap = _vmem_capacity_bytes()
    tile_budget = min(vmem_cap // 5, 24 * 1024 * 1024)
    tt = _pick_time_tile(t, c * (x_it + o_it), b, tile_budget)

    # Scoped-VMEM limit: double-buffered x/z/mask + weight + headroom, clamped per-gen
    # (~38 MiB max on v7x's 64 MiB/TC, up to ~77 MiB on v5e/v6e's 128 MiB).
    vmem_est = 2 * c * tt * (x_it + o_it) + 2 * tt * 4 + 2 * c * c * w_it
    max_scoped = min(int(0.60 * vmem_cap), 80 * 1024 * 1024)
    vmem_limit = int(min(max(int(1.5 * vmem_est) + (1 << 20), 16 * 1024 * 1024), max_scoped))

    kernel = functools.partial(_invconv_kernel, mxu_bf16=mxu_bf16)
    grid = (b, pl.cdiv(t, tt))

    def build(weight_spec):
        return pl.pallas_call(
            kernel,
            out_shape=jax.ShapeDtypeStruct((b, c, t), out_dtype),
            grid_spec=pltpu.PrefetchScalarGridSpec(
                num_scalar_prefetch=0,
                grid=grid,
                in_specs=[
                    pl.BlockSpec((None, c, tt), lambda i, j: (i, 0, j)),  # x (batch squeezed)
                    weight_spec,                                          # resident weight
                    pl.BlockSpec((None, 1, tt), lambda i, j: (i, 0, j)),  # mask
                ],
                out_specs=pl.BlockSpec((None, c, tt), lambda i, j: (i, 0, j)),
            ),
            compiler_params=pltpu.CompilerParams(
                dimension_semantics=("parallel", "parallel"),
                vmem_limit_bytes=vmem_limit),
        )

    # Constant-index weight only needs one VMEM buffer (saves C*C bytes of v7x headroom);
    # fall back to default double-buffering if this jax version rejects Buffered(1).
    try:
        w_spec = pl.BlockSpec((c, c), lambda i, j: (0, 0), pipeline_mode=pl.Buffered(1))
        return build(w_spec)(x, w_full, mask_f32)
    except Exception:
        w_spec = pl.BlockSpec((c, c), lambda i, j: (0, 0))
        return build(w_spec)(x, w_full, mask_f32)


# ------------------------------ Module glue ------------------------------- #
def make_invconv_params(channels, num_splits=4, seed=0):
    """Deterministic parameter init mirroring InvConvNear.__init__."""
    assert num_splits % 2 == 0
    key = jax.random.PRNGKey(seed)
    w_rand = jax.random.normal(key, (num_splits, num_splits), dtype=jnp.float32)
    w_init, _ = jnp.linalg.qr(w_rand)
    det = jnp.linalg.det(w_init)
    w_init = jnp.where(det < 0, w_init.at[:, 0].multiply(-1.0), w_init)
    return {"weight": w_init, "channels": channels, "num_splits": num_splits}


def _fold_weight(weight, channels, num_splits):
    """Build the dense (C, C) weight equivalent to: group channels into NS splits,
    apply the (NS, NS) 1x1 conv per group, ungroup.  Tiny; built once per call."""
    m = channels // num_splits
    half = num_splits // 2
    ch = jnp.arange(channels)
    h = ch // (m * half)
    rem = ch % (m * half)
    mm = rem // half          # group index within a split
    r = rem % half
    g = (h * half + r) * m + mm  # original channel -> grouped flat index (s*M + m)
    w_block = jnp.kron(weight, jnp.eye(m, dtype=weight.dtype))  # block-diag in grouped order
    return w_block[g][:, g]


def invconv_near_forward(params, x, x_mask=None, no_jacobian=False,
                         out_dtype=None, mxu_bf16=False):
    """Forward pass of InvConvNear (reverse=False).

    x: (B, C, T); x_mask: (B, 1, T) or None.
    out_dtype: optional output storage dtype (downcast happens at the in-kernel store,
               so it adds NO extra HBM pass); defaults to x.dtype.
    mxu_bf16: cast matmul operands to bf16 *inside* the kernel (f32 accumulation kept);
              HBM I/O dtypes are unchanged.  Useful at large C on v5e.
    Returns (z, logdet) matching the PyTorch module semantics.
    """
    weight = params["weight"]
    ns = params["num_splits"]
    b, c, t = x.shape
    assert c % ns == 0

    if x_mask is None:
        mask = jnp.ones((b, 1, t), dtype=jnp.float32)
        x_len = jnp.ones((b,), dtype=x.dtype) * t
    else:
        mask = x_mask.astype(jnp.float32)
        x_len = jnp.sum(x_mask.astype(x.dtype), axis=(1, 2))

    # Fold group-permutation + block-diagonal structure into a dense (C, C) weight once.
    # Kept in f32 regardless of I/O dtypes (preserves invertibility if a reverse path is added).
    w_full = _fold_weight(weight, c, ns).astype(jnp.float32)

    z = _invconv_pallas(x, w_full, mask, out_dtype=out_dtype, mxu_bf16=mxu_bf16)

    if no_jacobian:
        logdet = jnp.zeros((), dtype=x.dtype)
    else:
        # torch.logdet(weight): NaN if det < 0, matching torch semantics.
        # TODO(synk): a trained weight with negative det silently yields NaN logdet (same as torch).
        logdet = jnp.log(jnp.linalg.det(weight)) * (c / ns) * x_len
    return z, logdet


# ------------------------------- Reference -------------------------------- #
def _reference_forward(params, x, x_mask):
    """Pure-JAX replica of the PyTorch view/permute/conv2d path."""
    weight = params["weight"]
    ns = params["num_splits"]
    b, c, t = x.shape
    m = c // ns
    mask = x_mask.astype(x.dtype)
    x_g = x.reshape(b, 2, m, ns // 2, t)
    x_g = jnp.transpose(x_g, (0, 1, 3, 2, 4)).reshape(b, ns, m, t)
    z_g = jnp.einsum("oi,bimt->bomt", weight, x_g)
    z = z_g.reshape(b, 2, ns // 2, m, t)
    z = jnp.transpose(z, (0, 1, 3, 2, 4)).reshape(b, c, t) * mask
    x_len = jnp.sum(mask, axis=(1, 2))
    logdet = jnp.log(jnp.linalg.det(weight)) * (c / ns) * x_len
    return z, logdet


if __name__ == "__main__":
    NUM_SPLITS = 4

    # ---- Case 1: small shapes, T < 128 exercises the ragged (masked-store) block ----
    B, C, T = 2, 8, 16
    params = make_invconv_params(C, num_splits=NUM_SPLITS, seed=0)

    key = jax.random.PRNGKey(0)
    kx, _ = jax.random.split(key)
    x = jax.random.normal(kx, (B, C, T), dtype=jnp.float32)
    lengths = jnp.array([T, T - 4])
    x_mask = (jnp.arange(T)[None, None, :] < lengths[:, None, None]).astype(jnp.float32)

    z, logdet = invconv_near_forward(params, x, x_mask)
    z = jax.block_until_ready(z)
    logdet = jax.block_until_ready(logdet)

    z_ref, logdet_ref = _reference_forward(params, x, x_mask)
    assert jnp.allclose(z, z_ref, atol=1e-5, rtol=1e-5), "z mismatch vs reference"
    assert jnp.allclose(logdet, logdet_ref, atol=1e-5, rtol=1e-5), "logdet mismatch"

    # ---- Case 2: T multiple of 128 exercises the lane-dense tiled grid ----
    B2, C2, T2 = 2, 8, 256
    x2 = jax.random.normal(jax.random.PRNGKey(1), (B2, C2, T2), dtype=jnp.float32)
    lengths2 = jnp.array([T2, T2 - 37])
    mask2 = (jnp.arange(T2)[None, None, :] < lengths2[:, None, None]).astype(jnp.float32)

    z2, ld2 = invconv_near_forward(params, x2, mask2)
    z2 = jax.block_until_ready(z2)
    z2_ref, ld2_ref = _reference_forward(params, x2, mask2)
    assert jnp.allclose(z2, z2_ref, atol=1e-5, rtol=1e-5), "tiled z mismatch"
    assert jnp.allclose(ld2, ld2_ref, atol=1e-5, rtol=1e-5), "tiled logdet mismatch"

    # ---- Case 3: in-kernel bf16 MXU operands + bf16 store (no wrapper HBM passes) ----
    z3, _ = invconv_near_forward(params, x2, mask2, out_dtype=jnp.bfloat16, mxu_bf16=True)
    z3 = jax.block_until_ready(z3)
    assert jnp.allclose(z3.astype(jnp.float32), z2_ref, atol=3e-2, rtol=3e-2), "bf16 z mismatch"

    # ---- Case 4: B=1, non-128-multiple T > 128 -> even grid extent + ragged last block ----
    B4, C4, T4 = 1, 8, 200
    x4 = jax.random.normal(jax.random.PRNGKey(2), (B4, C4, T4), dtype=jnp.float32)
    mask4 = (jnp.arange(T4)[None, None, :] < 150).astype(jnp.float32)
    z4, ld4 = invconv_near_forward(params, x4, mask4)
    z4 = jax.block_until_ready(z4)
    z4_ref, ld4_ref = _reference_forward(params, x4, mask4)
    assert jnp.allclose(z4, z4_ref, atol=1e-5, rtol=1e-5), "ragged z mismatch"
    assert jnp.allclose(ld4, ld4_ref, atol=1e-5, rtol=1e-5), "ragged logdet mismatch"

    print("KERNEL_OK")
</pallas_src>

<mosaic_0001>
module attributes {stable_mosaic.version = 11 : i64} {
  func.func @_invconv_kernel(%arg0: i32, %arg1: i32, %arg2: memref<1x8x128xf32, #tpu.memory_space<vmem>>, %arg3: memref<8x8xf32, #tpu.memory_space<vmem>>, %arg4: memref<1x1x128xf32, #tpu.memory_space<vmem>>, %arg5: memref<1x8x128xf32, #tpu.memory_space<vmem>>) attributes {dimension_semantics = [#tpu.dimension_semantics<parallel>, #tpu.dimension_semantics<parallel>], iteration_bounds = array<i64: 2, 1>, scalar_prefetch = 0 : i64, scratch_operands = 0 : i64, tpu.core_type = #tpu.core_type<tc>, window_params = [{transform_indices = @transform_0, window_bounds = array<i64: 1, 8, 128>}, {pipeline_mode = #tpu.pipeline_mode<synchronous>, transform_indices = @transform_1, window_bounds = array<i64: 8, 8>}, {transform_indices = @transform_2, window_bounds = array<i64: 1, 1, 128>}, {transform_indices = @transform_3, window_bounds = array<i64: 1, 8, 128>}]} {
    %c0 = arith.constant 0 : index
    %c0_0 = arith.constant 0 : index
    %c0_1 = arith.constant 0 : index
    %0 = vector.load %arg2[%c0, %c0_0, %c0_1] : memref<1x8x128xf32, #tpu.memory_space<vmem>>, vector<1x8x128xf32>
    %1 = vector.shape_cast %0 : vector<1x8x128xf32> to vector<8x128xf32>
    %c0_2 = arith.constant 0 : index
    %c0_3 = arith.constant 0 : index
    %2 = vector.load %arg3[%c0_2, %c0_3] : memref<8x8xf32, #tpu.memory_space<vmem>>, vector<8x8xf32>
    %cst = arith.constant dense<0.000000e+00> : vector<8x128xf32>
    %3 = tpu.matmul %2, %1, %cst {dimension_numbers = #tpu.dot_dimension_numbers<[1], [0], [0], [1], [0, 0, 1, 1], [], []>} : vector<8x8xf32>, vector<8x128xf32>, vector<8x128xf32> -> vector<8x128xf32>
    %c0_4 = arith.constant 0 : index
    %c0_5 = arith.constant 0 : index
    %c0_6 = arith.constant 0 : index
    %4 = vector.load %arg4[%c0_4, %c0_5, %c0_6] : memref<1x1x128xf32, #tpu.memory_space<vmem>>, vector<1x1x128xf32>
    %5 = vector.shape_cast %4 : vector<1x1x128xf32> to vector<1x128xf32>
    %6 = vector.broadcast %5 : vector<1x128xf32> to vector<8x128xf32>
    %7 = arith.mulf %3, %6 : vector<8x128xf32>
    %c0_7 = arith.constant 0 : index
    %c0_8 = arith.constant 0 : index
    %c0_9 = arith.constant 0 : index
    %8 = vector.load %arg5[%c0_7, %c0_8, %c0_9] : memref<1x8x128xf32, #tpu.memory_space<vmem>>, vector<1x8x128xf32>
    %9 = vector.shape_cast %8 : vector<1x8x128xf32> to vector<8x128xf32>
    %10 = vector.shape_cast %7 : vector<8x128xf32> to vector<1x8x128xf32>
    tpu.vector_store %arg5[%c0_7, %c0_8, %c0_9], %10 {strides = array<i32>} : memref<1x8x128xf32, #tpu.memory_space<vmem>>, vector<1x8x128xf32>,
    return
  }
  func.func @transform_0(%arg0: i32, %arg1: i32) -> (i32, i32, i32) {
    %c0_i32 = arith.constant 0 : i32
    %c0_i32_0 = arith.constant 0 : i32
    return %arg0, %c0_i32, %arg1 : i32, i32, i32
  }
  func.func @transform_1(%arg0: i32, %arg1: i32) -> (i32, i32) {
    %c0_i32 = arith.constant 0 : i32
    %c0_i32_0 = arith.constant 0 : i32
    %c0_i32_1 = arith.constant 0 : i32
    return %c0_i32, %c0_i32_0 : i32, i32
  }
  func.func @transform_2(%arg0: i32, %arg1: i32) -> (i32, i32, i32) {
    %c0_i32 = arith.constant 0 : i32
    %c0_i32_0 = arith.constant 0 : i32
    return %arg0, %c0_i32, %arg1 : i32, i32, i32
  }
  func.func @transform_3(%arg0: i32, %arg1: i32) -> (i32, i32, i32) {
    %c0_i32 = arith.constant 0 : i32
    %c0_i32_0 = arith.constant 0 : i32
    return %arg0, %c0_i32, %arg1 : i32, i32, i32
  }
}

module attributes {stable_mosaic.version = 11 : i64} {
  func.func @_invconv_kernel(%arg0: i32, %arg1: i32, %arg2: memref<1x8x128xf32, #tpu.memory_space<vmem>>, %arg3: memref<8x8xf32, #tpu.memory_space<vmem>>, %arg4: memref<1x1x128xf32, #tpu.memory_space<vmem>>, %arg5: memref<1x8x128xf32, #tpu.memory_space<vmem>>) attributes {dimension_semantics = [#tpu.dimension_semantics<parallel>, #tpu.dimension_semantics<parallel>], iteration_bounds = array<i64: 2, 1>, scalar_prefetch = 0 : i64, scratch_operands = 0 : i64, tpu.core_type = #tpu.core_type<tc>, window_params = [{transform_indices = @transform_0, window_bounds = array<i64: 1, 8, 128>}, {pipeline_mode = #tpu.pipeline_mode<synchronous>, transform_indices = @transform_1, window_bounds = array<i64: 8, 8>}, {transform_indices = @transform_2, window_bounds = array<i64: 1, 1, 128>}, {transform_indices = @transform_3, window_bounds = array<i64: 1, 8, 128>}]} {
    %c0 = arith.constant 0 : index
    %c0_0 = arith.constant 0 : index
    %c0_1 = arith.constant 0 : index
    %0 = vector.load %arg2[%c0, %c0_0, %c0_1] : memref<1x8x128xf32, #tpu.memory_space<vmem>>, vector<1x8x128xf32>
    %1 = vector.shape_cast %0 : vector<1x8x128xf32> to vector<8x128xf32>
    %c0_2 = arith.constant 0 : index
    %c0_3 = arith.constant 0 : index
    %2 = vector.load %arg3[%c0_2, %c0_3] : memref<8x8xf32, #tpu.memory_space<vmem>>, vector<8x8xf32>
    %cst = arith.constant dense<0.000000e+00> : vector<8x128xf32>
    %3 = tpu.matmul %2, %1, %cst {dimension_numbers = #tpu.dot_dimension_numbers<[1], [0], [0], [1], [0, 0, 1, 1], [], []>} : vector<8x8xf32>, vector<8x128xf32>, vector<8x128xf32> -> vector<8x128xf32>
    %c0_4 = arith.constant 0 : index
    %c0_5 = arith.constant 0 : index
    %c0_6 = arith.constant 0 : index
    %4 = vector.load %arg4[%c0_4, %c0_5, %c0_6] : memref<1x1x128xf32, #tpu.memory_space<vmem>>, vector<1x1x128xf32>
    %5 = vector.shape_cast %4 : vector<1x1x128xf32> to vector<1x128xf32>
    %6 = vector.broadcast %5 : vector<1x128xf32> to vector<8x128xf32>
    %7 = arith.mulf %3, %6 : vector<8x128xf32>
    %c0_7 = arith.constant 0 : index
    %c0_8 = arith.constant 0 : index
    %c0_9 = arith.constant 0 : index
    %8 = vector.load %arg5[%c0_7, %c0_8, %c0_9] : memref<1x8x128xf32, #tpu.memory_space<vmem>>, vector<1x8x128xf32>
    %9 = vector.shape_cast %8 : vector<1x8x128xf32> to vector<8x128xf32>
    %10 = vector.shape_cast %7 : vector<8x128xf32> to vector<1x8x128xf32>
    tpu.vector_store %arg5[%c0_7, %c0_8, %c0_9], %10 {strides = array<i32>} : memref<1x8x128xf32, #tpu.memory_space<vmem>>, vector<1x8x128xf32>,
    return
  }
  func.func @transform_0(%arg0: i32, %arg1: i32) -> (i32, i32, i32) {
    %c0_i32 = arith.constant 0 : i32
    %c0_i32_0 = arith.constant 0 : i32
    return %arg0, %c0_i32, %arg1 : i32, i32, i32
  }
  func.func @transform_1(%arg0: i32, %arg1: i32) -> (i32, i32) {
    %c0_i32 = arith.constant 0 : i32
    %c0_i32_0 = arith.constant 0 : i32
    %c0_i32_1 = arith.constant 0 : i32
    return %c0_i32, %c0_i32_0 : i32, i32
  }
  func.func @transform_2(%arg0: i32, %arg1: i32) -> (i32, i32, i32) {
    %c0_i32 = arith.constant 0 : i32
    %c0_i32_0 = arith.constant 0 : i32
    return %arg0, %c0_i32, %arg1 : i32, i32, i32
  }
  func.func @transform_3(%arg0: i32, %arg1: i32) -> (i32, i32, i32) {
    %c0_i32 = arith.constant 0 : i32
    %c0_i32_0 = arith.constant 0 : i32
    return %arg0, %c0_i32, %arg1 : i32, i32, i32
  }
}

</mosaic_0001>

<bundles_post_ra>
// kernel: tpu_custom_call.1
= control target key start
LH: loop header
LB: loop body
LE: loop exit
PB: predicated region body
PF: predicated region fallthrough
CT: control target
= control target key end

     0   :  { %8 = vsyncpa [#allocation3], 0  ;;  %s886_s0 = inlined_call_operand.hbm [shape: f32[2,8,16], index: 0, kind: input, shape index: {}]   ;;  %s887_s1 = inlined_call_operand.hbm [shape: f32[8,8], index: 1, kind: input, shape index: {}]   ;;  %s888_s2 = inlined_call_operand.hbm [shape: f32[2,1,16], index: 2, kind: input, shape index: {}]   ;;  %s889_s3 = inlined_call_operand.hbm [shape: f32[2,8,16], index: 3, kind: output, shape index: {}]  }
   0x1   :  { %10 = vsyncpa [#allocation3 + $0x1], 0 }
   0x2   :  { %11 = vsyncpa [#allocation6], 0 }
   0x3   :  { %12 = vsyncpa [#allocation4], 0 }
   0x4   :  { %14 = vsyncpa [#allocation4 + $0x1], 0  ;;  %s709_s12 = smov 0   ;;  %s711_s13 = smov 0  }
   0x5   :  { %s713_s14 = smov 0   ;;  %s715_s15 = smov 0  }
   0x6   :  { %s717_s16 = smov 0   ;;  %s719_s17 = smov 0  }
   0x7 LB: > { %s32_s18 = sadd.s32 1, %s682_s16  ;;  %s41_s19 = sadd.s32 1, %s674_s14  ;;  %s686_s17 = sphi %s719_s17, %s20_s17   ;;  %s682_s16 = sphi %s717_s16, %s900_s16   ;;  %s678_s15 = sphi %s715_s15, %s899_s15   ;;  %s674_s14 = sphi %s713_s14, %s898_s14   ;;  %s670_s13 = sphi %s711_s13, %s897_s13   ;;  %s666_s12 = sphi %s709_s12, %s896_s12  }
   0x8   : > { %p34_p0 = scmp.ge.s32.totalorder %s32_s18, 2  ;;  %p48_p1 = scmp.ne.s32.totalorder %s674_s14, %s670_s13 }
   0x9   : > { %p49_p2 = scmp.eq.s32.totalorder %s686_s17, 0  ;;  %p415_p3 = scmp.ge.s32.totalorder %s686_s17, 2 }
   0xa   : > { %s902_s18 = smov (%p34_p0, %s32_s18), 0  ;;  %p453_p5 = scmp.lt.s32.totalorder %s686_s17, 2 }
   0xb   : > { %p750_p4 = por %p49_p2, %p48_p1  ;;  %s36_s21 = ssub.s32 %s682_s16, %s902_s18 }
   0xc   : > { %s167_s22 = sand.u32 1, %s686_s17   ;;  %p39_p6 = scmp.eq.s32.totalorder %s36_s21, 0 }
   0xd   : > { %s169_s23 = sand.u32 1, %s674_s14   ;;  %s417_s24 = sshll.u32 %s682_s16, 3 }
   0xe   : > { %s761_s25 = scalar_select %p39_p6, %s674_s14, %s41_s19  }
   0xf   : > { %s416_s26 = sshll.u32 %s169_s23, 3  ;;  %s176_s29 = scalar_lea.hbm %s886_s0, %s417_s24 }
  0x10   : > { %s178_s30 = sshll.u32 %s176_s29, 4  ;;  %s171_s4 = scalar_lea.vmem [#allocation2], %s416_s26  ;;  %s179_s30 = int_to_ptr.hbm [resolvable:$true] %s178_s30 }
  0x11   : > { %s180_s5 = sshll.u32 %s171_s4, 4  ;;  %p772_p7 = pnand %p453_p5, %p750_p4  ;;  %s181_s5 = int_to_ptr.vmem [resolvable:$true] %s180_s5 }
  0x12   : > { %s776_s7 = scalar_lea.sflag [#allocation3], %s167_s22  ;;  %s782_s8 = sadd.s32 4294967295, %s686_s17  }
  0x13   : > { %444 = dma.hbm_to_vmem [thread:$0]  (!%p772_p7), %s179_s30, 128, %s181_s5, %s776_s7  }
  0x14   : > { %s412_s9 = sadd.s32 4294967294, %s686_s17   ;;  %p54_p8 = scmp.ne.s32.totalorder %s670_s13, %s666_s12 }
  0x15   : > { %p55_p9 = scmp.eq.s32.totalorder %s782_s8, 0  ;;  %p129_p10 = scmp.eq.s32.totalorder %s782_s8, 1 }
  0x16   : > { %p135_p11 = scmp.eq.s32.totalorder %s412_s9, 1  ;;  %p413_p12 = scmp.ge.s32.totalorder %s686_s17, 1 }
  0x17   : > { %p792_p13 = por %p55_p9, %p54_p8  ;;  %p799_p0 = por %p129_p10, %p48_p1 }
  0x18   : > { %p803_p2 = por %p135_p11, %p54_p8  ;;  %p142_p4 = scmp.lt.s32.totalorder %s686_s17, 3 }
  0x19   : > { %s154_s22 = sshll.u32 %s887_s1, 4  ;;  %s688_s26 = smov [#allocation5]   ;;  %s155_s22 = int_to_ptr.hbm [resolvable:$true] %s154_s22 }
  0x1a   : > { %p811_p5 = pnand %p413_p12, %p142_p4  ;;  %s156_s27 = sshll.u32 %s688_s26, 4  ;;  %s157_s27 = int_to_ptr.vmem [resolvable:$true] %s156_s27 }
  0x1b   : > { %s194_s30 = scalar_lea.hbm %s888_s2, %s682_s16  ;;  %s190_s5 = scalar_lea.vmem [#allocation7], %s169_s23 }
  0x1c   : > { %p437_p1 = pneg %p811_p5  ;;  %s196_s4 = sshll.u32 %s194_s30, 4  ;;  %s197_s4 = int_to_ptr.hbm [resolvable:$true] %s196_s4 }
  0x1d   : > { %s198_s9 = sshll.u32 %s190_s5, 4  ;;  %207 = sbr.rel (%p811_p5) target bundleno = 174 (0xae), region = 32  ;;  %s199_s9 = int_to_ptr.vmem [resolvable:$true] %s198_s9 }
  0x1e   : > { %p438_p6 = pnand %p437_p1, %p55_p9  ;;  %s209_s20 = sand.u32 (!%p811_p5), 1, %s782_s8  }
  0x1f   : > { %447 = dma.hbm_to_vmem [thread:$0]  (!%p772_p7), %s197_s4, 16, %s199_s9, %s776_s7  }
  0x20   : > { %440 = dma.hbm_to_vmem [thread:$0]  (!%p438_p6), %s155_s22, 128, %s157_s27, [#allocation6]  }
  0x21   : > { %s832_s21 = sand.u32 (!%p811_p5), 1, %s670_s13   ;;  %s210_s28 = scalar_lea.sflag (!%p811_p5), [#allocation3], %s209_s20 }
  0x22   : > { %s419_s26 = sshll.u32 %s832_s21, 3 }
  0x23   : > { %s213_s29 = scalar_lea.vmem [#allocation2], %s419_s26 }
  0x24   : > { %649 = dma.done.wait (%p792_p13), %s210_s28, 128  }
  0x25   : > { %651 = vsyncadd (%p792_p13), %s210_s28, 4294967168 }
  0x26   : > { %653 = dma.done.wait (%p55_p9), [#allocation6], 128  }
  0x27   : > { %655 = vsyncadd (%p55_p9), [#allocation6], 4294967168  ;;  %s227_s23 = scalar_lea.vmem [#allocation7], %s832_s21 }
  0x28   : > { %657 = dma.done.wait (%p792_p13), %s210_s28, 16  }
  0x29   : > { %659 = vsyncadd (%p792_p13), %s210_s28, 4294967280  ;;  %vm257_vm0 = vcmask 64512   ;;  %v255_v0 = vld [vmem:[%s213_s29] sm:$0xff]  ;;  %v256_v1 = vld [vmem:[#allocation5] sm:$0xff]  ;;  %s424_s6 = sshll.u32 %s678_s15, 3  ;;  %s254_s24 = scalar_lea.vmem [#allocation8], %s419_s26 }
  0x2a   : > { %276 = vmatpush.msra.mxu0 %v255_v0  ;;  %s299_s8 = scalar_lea.hbm %s889_s3, %s424_s6  ;;  %v505_v2 = vld [vmem:[%s227_s23] ss:$0 sm:$0xff]  ;;  %s301_s27 = sshll.u32 %s254_s24, 4  ;;  %s302_s27 = int_to_ptr.vmem [resolvable:$true] %s301_s27 }
  0x2b   : > { %422 = vmatmul.msk.f32.vlgmr.msra.gmra.mxu0 %vm257_vm0, %v256_v1  ;;  %s303_s30 = sshll.u32 %s299_s8, 4  ;;  %s288_s10 = scalar_lea.sflag [#allocation4], %s832_s21  ;;  %s304_s30 = int_to_ptr.hbm [resolvable:$true] %s303_s30 }
  0x2c   : > { %s610_s4 = sshra.s32 %s304_s30, 4  ;;  %s616_s20 = scalar_lea.hbm %s889_s3, 16  ;;  %s611_s4 = int_to_ptr.hbm [resolvable:$true] %s610_s4 }
  0x2d   : > { %s612_s5 = scalar_lea.hbm %s611_s4, 8  ;;  %p617_p10 = scmp.lt.s32.totalorder %s611_s4, %s889_s3 }
  0x2e   : > { %p613_p7 = scmp.ne.s32.totalorder %s611_s4, %s612_s5  ;;  %p618_p11 = scmp.lt.s32.totalorder %s616_s20, %s612_s5 }
  0x30   : > { %p614_p8 = pnand %p613_p7, %p799_p0  ;;  %p619_p12 = por %p618_p11, %p617_p10 }
  0x32   : > { %p615_p9 = pneg %p614_p8 }
  0x34   : > { %p620_p13 = pnand %p619_p12, %p615_p9 }
  0xa8   : > { %v278_v3 = vpop.f32.mrf.mxu0 }
  0xa9   : > { %v285_v4 = vmul.f32 %v505_v2, %v278_v3 }
  0xab   : > { %286 = vst [vmem:[%s254_s24] sm:$0xff] %v285_v4 }
  0xac   : > { %623 = shalt.err (!%p620_p13)
}
  0xad   : > { %435 = dma.vmem_to_hbm [thread:$0]  (%p799_p0), %s302_s27, 128, %s304_s30, %s288_s10  }
  0xae PF: > { %s315_s21 = sand.u32 1, %s666_s12   ;;  %p449_p4 = pnand %p415_p3, %p803_p2 }
  0xaf   : > { %s316_s29 = scalar_lea.sflag [#allocation4], %s315_s21 }
  0xb0   : > { %p450_p5 = pneg %p449_p4 }
  0xb2   : > { %661 = dma.done.wait (%p450_p5), %s316_s29, 128  }
  0xb3   : > { %663 = vsyncadd (%p450_p5), %s316_s29, 4294967168  ;;  %s20_s17 = sadd.s32 1, %s686_s17   ;;  %s896_s12 = smov %s670_s13 }
  0xb4   : > { %p17_p1 = scmp.ge.s32.totalorder %s20_s17, 4   ;;  %s897_s13 = smov %s674_s14 }
  0xb5   : > { %s898_s14 = smov %s761_s25  ;;  %s899_s15 = smov %s682_s16 }
  0xb6   : > { %s900_s16 = smov %s902_s18  ;;  %19 = sbr.rel (!%p17_p1) target bundleno = 7 (0x7), region = 92 }
  0xbb   :  { %322 = vsyncpa [#allocation3], 1 }
  0xbc   :  { %324 = vsyncpa [#allocation3 + $0x1], 1 }
  0xbd   :  { %325 = vsyncpa [#allocation6], 1 }
  0xbe   :  { %326 = vsyncpa [#allocation4], 1 }
  0xbf   :  { %328 = vsyncpa [#allocation4 + $0x1], 1 }

// kernel: tpu_custom_call.1
= control target key start
LH: loop header
LB: loop body
LE: loop exit
PB: predicated region body
PF: predicated region fallthrough
CT: control target
= control target key end

     0   :  { %8 = vsyncpa [#allocation3], 0  ;;  %s886_s0 = inlined_call_operand.hbm [shape: f32[2,8,16], index: 0, kind: input, shape index: {}]   ;;  %s887_s1 = inlined_call_operand.hbm [shape: f32[8,8], index: 1, kind: input, shape index: {}]   ;;  %s888_s2 = inlined_call_operand.hbm [shape: f32[2,1,16], index: 2, kind: input, shape index: {}]   ;;  %s889_s3 = inlined_call_operand.hbm [shape: f32[2,8,16], index: 3, kind: output, shape index: {}]  }
   0x1   :  { %10 = vsyncpa [#allocation3 + $0x1], 0 }
   0x2   :  { %11 = vsyncpa [#allocation6], 0 }
   0x3   :  { %12 = vsyncpa [#allocation4], 0 }
   0x4   :  { %14 = vsyncpa [#allocation4 + $0x1], 0  ;;  %s709_s12 = smov 0   ;;  %s711_s13 = smov 0  }
   0x5   :  { %s713_s14 = smov 0   ;;  %s715_s15 = smov 0  }
   0x6   :  { %s717_s16 = smov 0   ;;  %s719_s17 = smov 0  }
   0x7 LB: > { %s32_s18 = sadd.s32 1, %s682_s16  ;;  %s41_s19 = sadd.s32 1, %s674_s14  ;;  %s686_s17 = sphi %s719_s17, %s20_s17   ;;  %s682_s16 = sphi %s717_s16, %s900_s16   ;;  %s678_s15 = sphi %s715_s15, %s899_s15   ;;  %s674_s14 = sphi %s713_s14, %s898_s14   ;;  %s670_s13 = sphi %s711_s13, %s897_s13   ;;  %s666_s12 = sphi %s709_s12, %s896_s12  }
   0x8   : > { %p34_p0 = scmp.ge.s32.totalorder %s32_s18, 2  ;;  %p48_p1 = scmp.ne.s32.totalorder %s674_s14, %s670_s13 }
   0x9   : > { %p49_p2 = scmp.eq.s32.totalorder %s686_s17, 0  ;;  %p415_p3 = scmp.ge.s32.totalorder %s686_s17, 2 }
   0xa   : > { %s902_s18 = smov (%p34_p0, %s32_s18), 0  ;;  %p453_p5 = scmp.lt.s32.totalorder %s686_s17, 2 }
   0xb   : > { %p750_p4 = por %p49_p2, %p48_p1  ;;  %s36_s21 = ssub.s32 %s682_s16, %s902_s18 }
   0xc   : > { %s167_s22 = sand.u32 1, %s686_s17   ;;  %p39_p6 = scmp.eq.s32.totalorder %s36_s21, 0 }
   0xd   : > { %s169_s23 = sand.u32 1, %s674_s14   ;;  %s417_s24 = sshll.u32 %s682_s16, 3 }
   0xe   : > { %s761_s25 = scalar_select %p39_p6, %s674_s14, %s41_s19  }
   0xf   : > { %s416_s26 = sshll.u32 %s169_s23, 3  ;;  %s176_s29 = scalar_lea.hbm %s886_s0, %s417_s24 }
  0x10   : > { %s178_s30 = sshll.u32 %s176_s29, 4  ;;  %s171_s4 = scalar_lea.vmem [#allocation2], %s416_s26  ;;  %s179_s30 = int_to_ptr.hbm [resolvable:$true] %s178_s30 }
  0x11   : > { %s180_s5 = sshll.u32 %s171_s4, 4  ;;  %p772_p7 = pnand %p453_p5, %p750_p4  ;;  %s181_s5 = int_to_ptr.vmem [resolvable:$true] %s180_s5 }
  0x12   : > { %s776_s7 = scalar_lea.sflag [#allocation3], %s167_s22  ;;  %s782_s8 = sadd.s32 4294967295, %s686_s17  }
  0x13   : > { %444 = dma.hbm_to_vmem [thread:$0]  (!%p772_p7), %s179_s30, 128, %s181_s5, %s776_s7  }
  0x14   : > { %s412_s9 = sadd.s32 4294967294, %s686_s17   ;;  %p54_p8 = scmp.ne.s32.totalorder %s670_s13, %s666_s12 }
  0x15   : > { %p55_p9 = scmp.eq.s32.totalorder %s782_s8, 0  ;;  %p129_p10 = scmp.eq.s32.totalorder %s782_s8, 1 }
  0x16   : > { %p135_p11 = scmp.eq.s32.totalorder %s412_s9, 1  ;;  %p413_p12 = scmp.ge.s32.totalorder %s686_s17, 1 }
  0x17   : > { %p792_p13 = por %p55_p9, %p54_p8  ;;  %p799_p0 = por %p129_p10, %p48_p1 }
  0x18   : > { %p803_p2 = por %p135_p11, %p54_p8  ;;  %p142_p4 = scmp.lt.s32.totalorder %s686_s17, 3 }
  0x19   : > { %s154_s22 = sshll.u32 %s887_s1, 4  ;;  %s688_s26 = smov [#allocation5]   ;;  %s155_s22 = int_to_ptr.hbm [resolvable:$true] %s154_s22 }
  0x1a   : > { %p811_p5 = pnand %p413_p12, %p142_p4  ;;  %s156_s27 = sshll.u32 %s688_s26, 4  ;;  %s157_s27 = int_to_ptr.vmem [resolvable:$true] %s156_s27 }
  0x1b   : > { %s194_s30 = scalar_lea.hbm %s888_s2, %s682_s16  ;;  %s190_s5 = scalar_lea.vmem [#allocation7], %s169_s23 }
  0x1c   : > { %p437_p1 = pneg %p811_p5  ;;  %s196_s4 = sshll.u32 %s194_s30, 4  ;;  %s197_s4 = int_to_ptr.hbm [resolvable:$true] %s196_s4 }
  0x1d   : > { %s198_s9 = sshll.u32 %s190_s5, 4  ;;  %207 = sbr.rel (%p811_p5) target bundleno = 174 (0xae), region = 32  ;;  %s199_s9 = int_to_ptr.vmem [resolvable:$true] %s198_s9 }
  0x1e   : > { %p438_p6 = pnand %p437_p1, %p55_p9  ;;  %s209_s20 = sand.u32 (!%p811_p5), 1, %s782_s8  }
  0x1f   : > { %447 = dma.hbm_to_vmem [thread:$0]  (!%p772_p7), %s197_s4, 16, %s199_s9, %s776_s7  }
  0x20   : > { %440 = dma.hbm_to_vmem [thread:$0]  (!%p438_p6), %s155_s22, 128, %s157_s27, [#allocation6]  }
  0x21   : > { %s832_s21 = sand.u32 (!%p811_p5), 1, %s670_s13   ;;  %s210_s28 = scalar_lea.sflag (!%p811_p5), [#allocation3], %s209_s20 }
  0x22   : > { %s419_s26 = sshll.u32 %s832_s21, 3 }
  0x23   : > { %s213_s29 = scalar_lea.vmem [#allocation2], %s419_s26 }
  0x24   : > { %649 = dma.done.wait (%p792_p13), %s210_s28, 128  }
  0x25   : > { %651 = vsyncadd (%p792_p13), %s210_s28, 4294967168 }
  0x26   : > { %653 = dma.done.wait (%p55_p9), [#allocation6], 128  }
  0x27   : > { %655 = vsyncadd (%p55_p9), [#allocation6], 4294967168  ;;  %s227_s23 = scalar_lea.vmem [#allocation7], %s832_s21 }
  0x28   : > { %657 = dma.done.wait (%p792_p13), %s210_s28, 16  }
  0x29   : > { %659 = vsyncadd (%p792_p13), %s210_s28, 4294967280  ;;  %vm257_vm0 = vcmask 64512   ;;  %v255_v0 = vld [vmem:[%s213_s29] sm:$0xff]  ;;  %v256_v1 = vld [vmem:[#allocation5] sm:$0xff]  ;;  %s424_s6 = sshll.u32 %s678_s15, 3  ;;  %s254_s24 = scalar_lea.vmem [#allocation8], %s419_s26 }
  0x2a   : > { %276 = vmatpush.msra.mxu0 %v255_v0  ;;  %s299_s8 = scalar_lea.hbm %s889_s3, %s424_s6  ;;  %v505_v2 = vld [vmem:[%s227_s23] ss:$0 sm:$0xff]  ;;  %s301_s27 = sshll.u32 %s254_s24, 4  ;;  %s302_s27 = int_to_ptr.vmem [resolvable:$true] %s301_s27 }
  0x2b   : > { %422 = vmatmul.msk.f32.vlgmr.msra.gmra.mxu0 %vm257_vm0, %v256_v1  ;;  %s303_s30 = sshll.u32 %s299_s8, 4  ;;  %s288_s10 = scalar_lea.sflag [#allocation4], %s832_s21  ;;  %s304_s30 = int_to_ptr.hbm [resolvable:$true] %s303_s30 }
  0x2c   : > { %s610_s4 = sshra.s32 %s304_s30, 4  ;;  %s616_s20 = scalar_lea.hbm %s889_s3, 16  ;;  %s611_s4 = int_to_ptr.hbm [resolvable:$true] %s610_s4 }
  0x2d   : > { %s612_s5 = scalar_lea.hbm %s611_s4, 8  ;;  %p617_p10 = scmp.lt.s32.totalorder %s611_s4, %s889_s3 }
  0x2e   : > { %p613_p7 = scmp.ne.s32.totalorder %s611_s4, %s612_s5  ;;  %p618_p11 = scmp.lt.s32.totalorder %s616_s20, %s612_s5 }
  0x30   : > { %p614_p8 = pnand %p613_p7, %p799_p0  ;;  %p619_p12 = por %p618_p11, %p617_p10 }
  0x32   : > { %p615_p9 = pneg %p614_p8 }
  0x34   : > { %p620_p13 = pnand %p619_p12, %p615_p9 }
  0xa8   : > { %v278_v3 = vpop.f32.mrf.mxu0 }
  0xa9   : > { %v285_v4 = vmul.f32 %v505_v2, %v278_v3 }
  0xab   : > { %286 = vst [vmem:[%s254_s24] sm:$0xff] %v285_v4 }
  0xac   : > { %623 = shalt.err (!%p620_p13)
}
  0xad   : > { %435 = dma.vmem_to_hbm [thread:$0]  (%p799_p0), %s302_s27, 128, %s304_s30, %s288_s10  }
  0xae PF: > { %s315_s21 = sand.u32 1, %s666_s12   ;;  %p449_p4 = pnand %p415_p3, %p803_p2 }
  0xaf   : > { %s316_s29 = scalar_lea.sflag [#allocation4], %s315_s21 }
  0xb0   : > { %p450_p5 = pneg %p449_p4 }
  0xb2   : > { %661 = dma.done.wait (%p450_p5), %s316_s29, 128  }
  0xb3   : > { %663 = vsyncadd (%p450_p5), %s316_s29, 4294967168  ;;  %s20_s17 = sadd.s32 1, %s686_s17   ;;  %s896_s12 = smov %s670_s13 }
  0xb4   : > { %p17_p1 = scmp.ge.s32.totalorder %s20_s17, 4   ;;  %s897_s13 = smov %s674_s14 }
  0xb5   : > { %s898_s14 = smov %s761_s25  ;;  %s899_s15 = smov %s682_s16 }
  0xb6   : > { %s900_s16 = smov %s902_s18  ;;  %19 = sbr.rel (!%p17_p1) target bundleno = 7 (0x7), region = 92 }
  0xbb   :  { %322 = vsyncpa [#allocation3], 1 }
  0xbc   :  { %324 = vsyncpa [#allocation3 + $0x1], 1 }
  0xbd   :  { %325 = vsyncpa [#allocation6], 1 }
  0xbe   :  { %326 = vsyncpa [#allocation4], 1 }
  0xbf   :  { %328 = vsyncpa [#allocation4 + $0x1], 1 }

</bundles_post_ra>
